<compile_context>
chip_gen: v7x
topology: tpu7x:2x2x1
jax: 0.10.0
libtpu: 0.0.40
codegen_flags: <defaults>
</compile_context>

<pallas_src>
import jax
import jax.numpy as jnp
from jax.experimental import pallas as pl
from jax.experimental.pallas import tpu as pltpu

_LANE = 128
_SUBLANE = 8
# ~2 MiB per live buffer; amortizes per-grid-step overhead against 0.8-3.2 TB/s
# HBM while staying far under every generation's scoped-VMEM default.
_TARGET_BLOCK_BYTES = 2 * 1024 * 1024


def _largest_divisor_leq(n: int, cap: int) -> int:
    """Largest divisor of `n` that is <= cap (always >= 1)."""
    cap = max(1, min(n, cap))
    for d in range(cap, 0, -1):
        if n % d == 0:
            return d
    return 1


def _copy_kernel(x_ref, o_ref):
    # Fast-path body. Both refs are (nb, cpg, r_tile, 128) with identical dense
    # layouts: the channel shuffle is done by the BlockSpec index_maps, so this
    # is a whole-tile copy (unmasked stores, pure block re-addressing).
    o_ref[...] = x_ref[...]


def _transpose_kernel(x_ref, o_ref):
    # Fallback body. x_ref: (nb, g, cpg, HW) -> o_ref: (nb, cpg, g, HW).
    # The swapped axes include the sublane axis, so this costs some in-VMEM
    # relayout; it only runs when HW is not a multiple of 128 and the relayout
    # hides under the HBM DMA of this memory-bound op.
    # TODO(synk): for bf16/int8 activations, bitcast-pack pairs along HW before
    # the swap to avoid packed-row sublane shuffles.
    o_ref[...] = jnp.transpose(x_ref[...], (0, 2, 1, 3))


def channel_shuffle(x: jax.Array, groups: int,
                    target_block_bytes: int = _TARGET_BLOCK_BYTES) -> jax.Array:
    """Pallas implementation of ShuffleBlock.forward for NCHW inputs."""
    N, C, H, W = x.shape
    g = int(groups)
    assert C % g == 0, "channels must be divisible by groups"
    cpg = C // g
    if g == 1 or cpg == 1:
        return x  # the shuffle is the identity permutation

    HW = H * W
    itemsize = jnp.dtype(x.dtype).itemsize
    cost = pl.CostEstimate(flops=0, transcendentals=0,
                           bytes_accessed=2 * N * C * HW * itemsize)

    if HW % _LANE == 0:
        # ---------- fast path: shuffle expressed purely via index_maps ----------
        R = HW // _LANE
        operand = x.reshape(N, g, cpg, R, _LANE)

        # Tile the spatial row (sublane) axis only if one sample's group-slab
        # exceeds the budget; keep r_tile a multiple of 8 (or the full extent).
        per_row_bytes = cpg * _LANE * itemsize
        if R * per_row_bytes <= target_block_bytes:
            r_tile = R
        else:
            divisors8 = [d for d in range(_SUBLANE, R + 1, _SUBLANE) if R % d == 0]
            fitting = [d for d in divisors8 if d * per_row_bytes <= target_block_bytes]
            if fitting:
                r_tile = max(fitting)
            elif divisors8:
                r_tile = min(divisors8)
            else:
                r_tile = R
        num_r_tiles = R // r_tile

        # Aggregate samples per block at small-C*HW stages to amortize the
        # fixed per-grid-step overhead.
        per_block_bytes_nb1 = cpg * r_tile * _LANE * itemsize
        if r_tile == R:
            nb = _largest_divisor_leq(
                N, max(1, target_block_bytes // max(1, per_block_bytes_nb1)))
        else:
            nb = 1
        block_bytes = nb * per_block_bytes_nb1

        grid = (N // nb, g, num_r_tiles)  # >= 2 steps since g >= 2 here
        in_spec = pl.BlockSpec(
            (nb, None, cpg, r_tile, _LANE), lambda n, p, t: (n, p, 0, t, 0))
        out_spec = pl.BlockSpec(
            (nb, cpg, None, r_tile, _LANE), lambda n, p, t: (n, 0, p, t, 0))
        out_shape = jax.ShapeDtypeStruct((N, cpg, g, R, _LANE), x.dtype)
        kernel = _copy_kernel
        dim_sems = ("parallel", "parallel", "parallel")
    else:
        # ---------- fallback: HW cannot be lane-tiled (7x7 ... 56x56) ----------
        operand = x.reshape(N, g, cpg, HW)
        per_sample_bytes = C * HW * itemsize
        nb = _largest_divisor_leq(
            N, max(1, target_block_bytes // max(1, per_sample_bytes)))
        if N >= 2 and nb == N:
            nb = _largest_divisor_leq(N, N // 2)  # keep >= 2 parallel steps (v7x)
        block_bytes = nb * per_sample_bytes
        # TODO(synk): when N == 1 this grid has a single step and one v7x
        # TensorCore idles; split the cpg axis in that case.

        grid = (N // nb,)
        in_spec = pl.BlockSpec((nb, g, cpg, HW), lambda n: (n, 0, 0, 0))
        out_spec = pl.BlockSpec((nb, cpg, g, HW), lambda n: (n, 0, 0, 0))
        out_shape = jax.ShapeDtypeStruct((N, cpg, g, HW), x.dtype)
        kernel = _transpose_kernel
        dim_sems = ("parallel",)

    # Size the scoped VMEM limit to the actual live buffers (double-buffered
    # in + out) instead of relying on per-generation defaults.
    vmem_needed = 4 * block_bytes + (2 << 20)
    vmem_limit = int(min(max(vmem_needed, 16 << 20), 64 << 20))

    out = pl.pallas_call(
        kernel,
        out_shape=out_shape,
        grid_spec=pltpu.PrefetchScalarGridSpec(
            num_scalar_prefetch=0,
            grid=grid,
            in_specs=[in_spec],
            out_specs=out_spec,
        ),
        compiler_params=pltpu.CompilerParams(
            dimension_semantics=dim_sems,
            vmem_limit_bytes=vmem_limit,
        ),
        cost_estimate=cost,
    )(operand)

    # Free, contiguous reshape back to NCHW.
    return out.reshape(N, C, H, W)


def channel_shuffle_ref(x: jax.Array, groups: int) -> jax.Array:
    """Pure-JAX reference mirroring the PyTorch view/permute/reshape."""
    N, C, H, W = x.shape
    g = groups
    return (
        x.reshape(N, g, C // g, H, W)
        .transpose(0, 2, 1, 3, 4)
        .reshape(N, C, H, W)
    )


if __name__ == "__main__":
    key0, key1 = jax.random.split(jax.random.PRNGKey(0), 2)
    shuffle = jax.jit(channel_shuffle, static_argnums=(1,))

    # Primary case (exercises the fast, index_map-only path: HW % 128 == 0).
    N, C, H, W, groups = 2, 4, 16, 16, 2
    x = jax.random.normal(key0, (N, C, H, W), dtype=jnp.float32)
    out = jax.block_until_ready(shuffle(x, groups))
    ref = channel_shuffle_ref(x, groups)
    assert out.shape == ref.shape and out.dtype == ref.dtype
    assert jnp.array_equal(out, ref), "Pallas channel shuffle mismatch (fast path)"

    # Secondary case (exercises the odd-spatial fallback path: 7x7).
    x2 = jax.random.normal(key1, (2, 8, 7, 7), dtype=jnp.float32)
    out2 = jax.block_until_ready(shuffle(x2, 2))
    ref2 = channel_shuffle_ref(x2, 2)
    assert jnp.array_equal(out2, ref2), "Pallas channel shuffle mismatch (fallback)"

    print("KERNEL_OK")
</pallas_src>

<mosaic_0001>
module attributes {stable_mosaic.version = 11 : i64} {
  func.func @_copy_kernel(%arg0: i32, %arg1: i32, %arg2: i32, %arg3: memref<2x1x2x2x128xf32, #tpu.memory_space<vmem>>, %arg4: memref<2x2x1x2x128xf32, #tpu.memory_space<vmem>>) attributes {dimension_semantics = [#tpu.dimension_semantics<parallel>, #tpu.dimension_semantics<parallel>, #tpu.dimension_semantics<parallel>], iteration_bounds = array<i64: 1, 2, 1>, scalar_prefetch = 0 : i64, scratch_operands = 0 : i64, tpu.core_type = #tpu.core_type<tc>, window_params = [{transform_indices = @transform_0, window_bounds = array<i64: 2, 1, 2, 2, 128>}, {transform_indices = @transform_1, window_bounds = array<i64: 2, 2, 1, 2, 128>}]} {
    %c0 = arith.constant 0 : index
    %c0_0 = arith.constant 0 : index
    %c0_1 = arith.constant 0 : index
    %c0_2 = arith.constant 0 : index
    %c0_3 = arith.constant 0 : index
    %0 = vector.load %arg3[%c0, %c0_0, %c0_1, %c0_2, %c0_3] : memref<2x1x2x2x128xf32, #tpu.memory_space<vmem>>, vector<2x1x2x2x128xf32>
    %1 = vector.shape_cast %0 : vector<2x1x2x2x128xf32> to vector<2x2x2x128xf32>
    %c0_4 = arith.constant 0 : index
    %c0_5 = arith.constant 0 : index
    %c0_6 = arith.constant 0 : index
    %c0_7 = arith.constant 0 : index
    %c0_8 = arith.constant 0 : index
    %2 = vector.load %arg4[%c0_4, %c0_5, %c0_6, %c0_7, %c0_8] : memref<2x2x1x2x128xf32, #tpu.memory_space<vmem>>, vector<2x2x1x2x128xf32>
    %3 = vector.shape_cast %2 : vector<2x2x1x2x128xf32> to vector<2x2x2x128xf32>
    %4 = vector.shape_cast %1 : vector<2x2x2x128xf32> to vector<2x2x1x2x128xf32>
    tpu.vector_store %arg4[%c0_4, %c0_5, %c0_6, %c0_7, %c0_8], %4 {strides = array<i32>} : memref<2x2x1x2x128xf32, #tpu.memory_space<vmem>>, vector<2x2x1x2x128xf32>,
    return
  }
  func.func @transform_0(%arg0: i32, %arg1: i32, %arg2: i32) -> (i32, i32, i32, i32, i32) {
    %c0_i32 = arith.constant 0 : i32
    %c0_i32_0 = arith.constant 0 : i32
    %c0_i32_1 = arith.constant 0 : i32
    return %arg0, %arg1, %c0_i32, %arg2, %c0_i32_0 : i32, i32, i32, i32, i32
  }
  func.func @transform_1(%arg0: i32, %arg1: i32, %arg2: i32) -> (i32, i32, i32, i32, i32) {
    %c0_i32 = arith.constant 0 : i32
    %c0_i32_0 = arith.constant 0 : i32
    %c0_i32_1 = arith.constant 0 : i32
    return %arg0, %c0_i32, %arg1, %arg2, %c0_i32_0 : i32, i32, i32, i32, i32
  }
}

</mosaic_0001>

<bundles_post_ra>
// kernel: channel_shuffle.1
= control target key start
LH: loop header
LB: loop body
LE: loop exit
PB: predicated region body
PF: predicated region fallthrough
CT: control target
= control target key end

     0   :  { %s450_s6 = smov 0   ;;  %s452_s7 = smov 0   ;;  %s522_s0 = inlined_call_operand.vmem [shape: f32[2,2,2,2,128], index: 0, kind: input, shape index: {}]   ;;  %s523_s1 = inlined_call_operand.vmem [shape: f32[2,2,2,2,128], index: 1, kind: output, shape index: {}]  }
   0x1   :  { %s454_s8 = smov 0   ;;  %s456_s9 = smov 0  }
   0x2   :  { %s458_s10 = smov 0  }
   0x3 LB: > { %s26_s11 = sadd.s32 1, %s434_s9  ;;  %s345_s12 = sadd.s32 4294967295, %s438_s10   ;;  %s438_s10 = sphi %s458_s10, %s11_s10   ;;  %s434_s9 = sphi %s456_s9, %s528_s9   ;;  %s430_s8 = sphi %s454_s8, %s527_s8   ;;  %s426_s7 = sphi %s452_s7, %s526_s7   ;;  %s422_s6 = sphi %s450_s6, %s525_s6  }
   0x4   : > { %p28_p0 = scmp.ge.s32.totalorder %s26_s11, 2  ;;  %p48_p1 = scmp.ne.s32.totalorder %s426_s7, %s422_s6 }
   0x5   : > { %p49_p2 = scmp.eq.s32.totalorder %s438_s10, 0  ;;  %p82_p4 = scmp.eq.s32.totalorder %s345_s12, 1 }
   0x6   : > { %s530_s11 = smov (%p28_p0, %s26_s11), 0  ;;  %s41_s14 = sadd.s32 1, %s426_s7 }
   0x7   : > { %p50_p3 = por %p49_p2, %p48_p1  ;;  %s35_s13 = ssub.s32 %s434_s9, %s530_s11 }
   0x8   : > { %p39_p5 = scmp.eq.s32.totalorder %s35_s13, 0  ;;  %p485_p6 = por %p82_p4, %p48_p1 }
   0x9   : > { %p348_p7 = scmp.ge.s32.totalorder %s438_s10, 2 }
   0xa   : > { %s490_s16 = scalar_select %p39_p5, %s426_s7, %s41_s14  }
   0xb   : > { %104 = sbr.rel (%p348_p7) target bundleno = 25 (0x19), region = 16 }
  0x12   : > { %107 = sbr.rel (!%p50_p3) target bundleno = 25 (0x19), region = 20  ;;  %s109_s17 = sand.u32 (%p50_p3), 1, %s426_s7  }
  0x13   : > { %s359_s18 = sshll.u32 (%p50_p3), %s434_s9, 2  ;;  %s349_s19 = sshll.u32 (%p50_p3), %s109_s17, 3 }
  0x14   : > { %s118_s22 = scalar_lea.vmem (%p50_p3), %s522_s0, %s359_s18  ;;  %s111_s23 = scalar_lea.vmem (%p50_p3), [#allocation2], %s349_s19 }
  0x15   : > { %v134_v0 = vld [vmem:[%s118_s22] sm:$0xf] (%p50_p3)   ;;  %v138_v1 = vld [vmem:[%s118_s22 + $0x8] sm:$0xf] (%p50_p3)  }
  0x16   : > { %135 = vst [vmem:[%s111_s23] sm:$0xf] (%p50_p3), %v134_v0   ;;  %139 = vst [vmem:[%s111_s23 + $0x4] sm:$0xf] (%p50_p3), %v138_v1  }
  0x19 PF: > { %p352_p8 = scmp.ge.s32.totalorder %s438_s10, 1  ;;  %p171_p9 = scmp.lt.s32.totalorder %s438_s10, 3 }
  0x1b   : > { %p172_p10 = pnand %p352_p8, %p171_p9 }
  0x1c   : > { %s178_s24 = sand.u32 (!%p172_p10), 1, %s422_s6  }
  0x1d   : > { %175 = sbr.rel (%p172_p10) target bundleno = 43 (0x2b), region = 61  ;;  %s353_s25 = sshll.u32 (!%p172_p10), %s178_s24, 3 }
  0x1e   : > { %s180_s26 = scalar_lea.vmem (!%p172_p10), [#allocation2], %s353_s25  ;;  %s195_s27 = scalar_lea.vmem (!%p172_p10), [#allocation3], %s353_s25 }
  0x1f   : > { %v198_v2 = vld [vmem:[%s180_s26] sm:$0xff] (!%p172_p10)  }
  0x20   : > { %202 = vst [vmem:[%s195_s27] sm:$0xff] (!%p172_p10), %v198_v2  }
  0x24   : > { %212 = sbr.rel (!%p485_p6) target bundleno = 43 (0x2b), region = 69  ;;  %s356_s28 = sshll.u32 (%p485_p6), %s430_s8, 1 }
  0x25   : > { %s218_s2 = scalar_lea.vmem (%p485_p6), %s523_s1, %s356_s28 }
  0x27   : > { %v234_v3 = vld [vmem:[%s195_s27] sm:$0x3] (%p485_p6)  ;;  %v236_v4 = vld [vmem:[%s195_s27 + $0x2] sm:$0x3] (%p485_p6)  ;;  %v238_v5 = vld [vmem:[%s195_s27 + $0x4] sm:$0x3] (%p485_p6) }
  0x28   : > { %v240_v6 = vld [vmem:[%s195_s27 + $0x6] sm:$0x3] (%p485_p6)  ;;  %235 = vst [vmem:[%s218_s2] sm:$0x3] (%p485_p6), %v234_v3  ;;  %237 = vst [vmem:[%s218_s2 + $0x4] sm:$0x3] (%p485_p6), %v236_v4 }
  0x29   : > { %239 = vst [vmem:[%s218_s2 + $0x8] sm:$0x3] (%p485_p6), %v238_v5  ;;  %241 = vst [vmem:[%s218_s2 + $0xc] sm:$0x3] (%p485_p6), %v240_v6 }
  0x2b PF: > { %s11_s10 = sadd.s32 1, %s438_s10   ;;  %s525_s6 = smov %s426_s7 }
  0x2c   : > { %p8_p11 = scmp.ge.s32.totalorder %s11_s10, 4   ;;  %s526_s7 = smov %s490_s16 }
  0x2d   : > { %s527_s8 = smov %s434_s9  ;;  %s528_s9 = smov %s530_s11 }
  0x2e   :  { %10 = sbr.rel (!%p8_p11) target bundleno = 3 (0x3), region = 141 }

</bundles_post_ra>
